<compile_context>
chip_gen: v6e
topology: v6e:2x2x1
jax: 0.10.0
libtpu: 0.0.40
codegen_flags: <defaults>
</compile_context>

<pallas_src>
import jax
import jax.numpy as jnp
from jax.experimental import pallas as pl
from jax.experimental.pallas import tpu as pltpu


def classify_head_kernel(x_ref, w1_ref, b1_ref, w2_ref, b2_ref, w3_ref, b3_ref, o_ref):
    # x_ref : [TB, 768] bf16     w1_ref: [768, 512] bf16   b1_ref: [1, 512] f32
    # w2_ref: [512, 32]  bf16    b2_ref: [1, 32]   f32
    # w3_ref: [32, C]    bf16    b3_ref: [1, C]    f32     o_ref : [TB, C] f32
    x = x_ref[...]

    # Linear(768 -> 512) + ReLU   (bf16 MXU inputs, f32 accumulation)
    h1 = jnp.dot(x, w1_ref[...], preferred_element_type=jnp.float32) + b1_ref[...]
    h1 = jnp.maximum(h1, 0.0)
    # TODO(synk): nn.Dropout(0.1) is identity in eval mode; training-mode mask
    # (pltpu.prng_seed + pltpu.prng_random_bits) not implemented.

    # Linear(512 -> 32) + ReLU
    h2 = jnp.dot(h1.astype(jnp.bfloat16), w2_ref[...],
                 preferred_element_type=jnp.float32) + b2_ref[...]
    h2 = jnp.maximum(h2, 0.0)

    # Linear(32 -> C)
    logits = jnp.dot(h2.astype(jnp.bfloat16), w3_ref[...],
                     preferred_element_type=jnp.float32) + b3_ref[...]

    # LogSoftmax along the class axis (dim=1), numerically stable, in f32.
    m = jnp.max(logits, axis=-1, keepdims=True)
    shifted = logits - m
    lse = jnp.log(jnp.sum(jnp.exp(shifted), axis=-1, keepdims=True))
    o_ref[...] = (shifted - lse).astype(o_ref.dtype)


def _round_up(n, m):
    return -(-n // m) * m


def _select_tile_b(batch, desired):
    """Pick a batch tile: big enough to amortize per-step overhead, but with
    >=2 grid steps for moderate batches (v7x megacore), multiple of 128 for
    full MXU-row utilization on all generations."""
    min_tile = 128
    if batch <= 2 * min_tile:
        # Single grid step; block equals full batch extent (always legal).
        return batch
    n_steps = max(2, pl.cdiv(batch, desired))
    return min(desired, _round_up(pl.cdiv(batch, n_steps), min_tile))


def classify_head(x, w1, b1, w2, b2, w3, b3, *, tile_b=1024):
    """x: [B, 768] bf16 pooled PhoBERT output (produce bf16 upstream).
    Weights are [in, out] bf16; biases [1, out] f32."""
    if x.dtype != jnp.bfloat16:
        # Prefer emitting bf16 from the encoder epilogue so this fuses upstream.
        x = x.astype(jnp.bfloat16)

    B = x.shape[0]
    C = w3.shape[1]

    tb = _select_tile_b(B, tile_b)
    grid = (pl.cdiv(B, tb),)  # ragged last tile handled by Pallas boundary masking

    const = lambda shape: pl.BlockSpec(shape, lambda i: (0, 0))  # VMEM-resident

    return pl.pallas_call(
        classify_head_kernel,
        out_shape=jax.ShapeDtypeStruct((B, C), jnp.float32),
        grid=grid,
        in_specs=[
            pl.BlockSpec((tb, 768), lambda i: (i, 0)),   # x: streamed per batch tile
            const((768, 512)),                           # w1 (bf16)
            const((1, 512)),                             # b1
            const((512, 32)),                            # w2 (bf16)
            const((1, 32)),                              # b2
            const((32, C)),                              # w3 (bf16)
            const((1, C)),                               # b3
        ],
        out_specs=pl.BlockSpec((tb, C), lambda i: (i, 0)),
        compiler_params=pltpu.CompilerParams(
            dimension_semantics=("parallel",),
        ),
    )(x, w1, b1, w2, b2, w3, b3)


def classify_head_ref(x, w1, b1, w2, b2, w3, b3):
    """Pure-JAX reference with the same bf16/f32 mixed precision."""
    x = x.astype(jnp.bfloat16)
    h1 = jnp.maximum(
        jnp.dot(x, w1, preferred_element_type=jnp.float32) + b1, 0.0)
    h2 = jnp.maximum(
        jnp.dot(h1.astype(jnp.bfloat16), w2, preferred_element_type=jnp.float32) + b2, 0.0)
    logits = jnp.dot(h2.astype(jnp.bfloat16), w3, preferred_element_type=jnp.float32) + b3
    return jax.nn.log_softmax(logits, axis=-1)


def init_params(key, num_categories):
    """Deterministic init matching nn.Linear shapes (weights stored transposed).
    All weights in bf16 (MXU inputs), all biases in f32."""
    ks = jax.random.split(key, 6)

    def lin(kw, kb, fan_in, fan_out):
        bound = 1.0 / jnp.sqrt(fan_in)
        w = jax.random.uniform(kw, (fan_in, fan_out), jnp.float32, -bound, bound)
        b = jax.random.uniform(kb, (1, fan_out), jnp.float32, -bound, bound)
        return w.astype(jnp.bfloat16), b

    w1, b1 = lin(ks[0], ks[1], 768, 512)
    w2, b2 = lin(ks[2], ks[3], 512, 32)
    w3, b3 = lin(ks[4], ks[5], 32, num_categories)
    return w1, b1, w2, b2, w3, b3


if __name__ == "__main__":
    key = jax.random.PRNGKey(0)
    k_x, k_p = jax.random.split(key)

    batch = 8
    num_categories = 4

    # Stand-in for phobert(input)[1]: pooled embedding [B, 768], produced bf16.
    x = jax.random.normal(k_x, (batch, 768), jnp.float32).astype(jnp.bfloat16)
    params = init_params(k_p, num_categories)

    out = classify_head(x, *params)
    out = jax.block_until_ready(out)

    assert out.shape == (batch, num_categories)

    # sanity 1: log-softmax rows sum to ~1 in prob space
    row_sums = jnp.exp(out).sum(axis=1)
    assert jnp.allclose(row_sums, 1.0, atol=1e-4), row_sums

    # sanity 2: matches pure-JAX mixed-precision reference
    ref = classify_head_ref(x, *params)
    assert jnp.allclose(out, ref, atol=2e-2, rtol=2e-2), jnp.max(jnp.abs(out - ref))

    print("KERNEL_OK")
</pallas_src>

<mosaic_0001>
module attributes {stable_mosaic.version = 11 : i64} {
  func.func @classify_head_kernel(%arg0: i32, %arg1: memref<8x768xbf16, #tpu.memory_space<vmem>>, %arg2: memref<768x512xbf16, #tpu.memory_space<vmem>>, %arg3: memref<1x512xf32, #tpu.memory_space<vmem>>, %arg4: memref<512x32xbf16, #tpu.memory_space<vmem>>, %arg5: memref<1x32xf32, #tpu.memory_space<vmem>>, %arg6: memref<32x4xbf16, #tpu.memory_space<vmem>>, %arg7: memref<1x4xf32, #tpu.memory_space<vmem>>, %arg8: memref<8x4xf32, #tpu.memory_space<vmem>>) attributes {dimension_semantics = [#tpu.dimension_semantics<parallel>], iteration_bounds = array<i64: 1>, scalar_prefetch = 0 : i64, scratch_operands = 0 : i64, tpu.core_type = #tpu.core_type<tc>, window_params = [{transform_indices = @transform_0, window_bounds = array<i64: 8, 768>}, {pipeline_mode = #tpu.pipeline_mode<synchronous>, transform_indices = @transform_1, window_bounds = array<i64: 768, 512>}, {pipeline_mode = #tpu.pipeline_mode<synchronous>, transform_indices = @transform_2, window_bounds = array<i64: 1, 512>}, {pipeline_mode = #tpu.pipeline_mode<synchronous>, transform_indices = @transform_3, window_bounds = array<i64: 512, 32>}, {pipeline_mode = #tpu.pipeline_mode<synchronous>, transform_indices = @transform_4, window_bounds = array<i64: 1, 32>}, {pipeline_mode = #tpu.pipeline_mode<synchronous>, transform_indices = @transform_5, window_bounds = array<i64: 32, 4>}, {pipeline_mode = #tpu.pipeline_mode<synchronous>, transform_indices = @transform_6, window_bounds = array<i64: 1, 4>}, {transform_indices = @transform_7, window_bounds = array<i64: 8, 4>}]} {
    %c0 = arith.constant 0 : index
    %c0_0 = arith.constant 0 : index
    %0 = vector.load %arg1[%c0, %c0_0] : memref<8x768xbf16, #tpu.memory_space<vmem>>, vector<8x768xbf16>
    %c0_1 = arith.constant 0 : index
    %c0_2 = arith.constant 0 : index
    %1 = vector.load %arg2[%c0_1, %c0_2] : memref<768x512xbf16, #tpu.memory_space<vmem>>, vector<768x512xbf16>
    %cst = arith.constant dense<0.000000e+00> : vector<8x512xf32>
    %2 = tpu.matmul %0, %1, %cst {dimension_numbers = #tpu.dot_dimension_numbers<[1], [0], [0], [1], [0, 0, 1, 1], [], []>} : vector<8x768xbf16>, vector<768x512xbf16>, vector<8x512xf32> -> vector<8x512xf32>
    %c0_3 = arith.constant 0 : index
    %c0_4 = arith.constant 0 : index
    %3 = vector.load %arg3[%c0_3, %c0_4] : memref<1x512xf32, #tpu.memory_space<vmem>>, vector<1x512xf32>
    %4 = vector.broadcast %3 : vector<1x512xf32> to vector<8x512xf32>
    %5 = arith.addf %2, %4 : vector<8x512xf32>
    %cst_5 = arith.constant 0.000000e+00 : f32
    %6 = vector.broadcast %cst_5 : f32 to vector<8x512xf32>
    %7 = arith.maximumf %5, %6 : vector<8x512xf32>
    %8 = arith.truncf %7 : vector<8x512xf32> to vector<8x512xbf16>
    %c0_6 = arith.constant 0 : index
    %c0_7 = arith.constant 0 : index
    %9 = vector.load %arg4[%c0_6, %c0_7] : memref<512x32xbf16, #tpu.memory_space<vmem>>, vector<512x32xbf16>
    %cst_8 = arith.constant dense<0.000000e+00> : vector<8x32xf32>
    %10 = tpu.matmul %8, %9, %cst_8 {dimension_numbers = #tpu.dot_dimension_numbers<[1], [0], [0], [1], [0, 0, 1, 1], [], []>} : vector<8x512xbf16>, vector<512x32xbf16>, vector<8x32xf32> -> vector<8x32xf32>
    %c0_9 = arith.constant 0 : index
    %c0_10 = arith.constant 0 : index
    %11 = vector.load %arg5[%c0_9, %c0_10] : memref<1x32xf32, #tpu.memory_space<vmem>>, vector<1x32xf32>
    %12 = vector.broadcast %11 : vector<1x32xf32> to vector<8x32xf32>
    %13 = arith.addf %10, %12 : vector<8x32xf32>
    %cst_11 = arith.constant 0.000000e+00 : f32
    %14 = vector.broadcast %cst_11 : f32 to vector<8x32xf32>
    %15 = arith.maximumf %13, %14 : vector<8x32xf32>
    %16 = arith.truncf %15 : vector<8x32xf32> to vector<8x32xbf16>
    %c0_12 = arith.constant 0 : index
    %c0_13 = arith.constant 0 : index
    %17 = vector.load %arg6[%c0_12, %c0_13] : memref<32x4xbf16, #tpu.memory_space<vmem>>, vector<32x4xbf16>
    %cst_14 = arith.constant dense<0.000000e+00> : vector<8x4xf32>
    %18 = tpu.matmul %16, %17, %cst_14 {dimension_numbers = #tpu.dot_dimension_numbers<[1], [0], [0], [1], [0, 0, 1, 1], [], []>} : vector<8x32xbf16>, vector<32x4xbf16>, vector<8x4xf32> -> vector<8x4xf32>
    %c0_15 = arith.constant 0 : index
    %c0_16 = arith.constant 0 : index
    %19 = vector.load %arg7[%c0_15, %c0_16] : memref<1x4xf32, #tpu.memory_space<vmem>>, vector<1x4xf32>
    %20 = vector.broadcast %19 : vector<1x4xf32> to vector<8x4xf32>
    %21 = arith.addf %18, %20 : vector<8x4xf32>
    %cst_17 = arith.constant dense<0xFF800000> : vector<8xf32>
    %22 = vector.multi_reduction <maximumf>, %21, %cst_17 [1] : vector<8x4xf32> to vector<8xf32>
    %23 = vector.shape_cast %22 : vector<8xf32> to vector<8x1xf32>
    %24 = vector.broadcast %23 : vector<8x1xf32> to vector<8x4xf32>
    %25 = arith.subf %21, %24 : vector<8x4xf32>
    %26 = math.exp %25 : vector<8x4xf32>
    %cst_18 = arith.constant dense<0.000000e+00> : vector<8xf32>
    %27 = vector.multi_reduction <add>, %26, %cst_18 [1] : vector<8x4xf32> to vector<8xf32>
    %28 = vector.shape_cast %27 : vector<8xf32> to vector<8x1xf32>
    %29 = math.log %28 : vector<8x1xf32>
    %30 = vector.broadcast %29 : vector<8x1xf32> to vector<8x4xf32>
    %31 = arith.subf %25, %30 : vector<8x4xf32>
    %c0_19 = arith.constant 0 : index
    %c0_20 = arith.constant 0 : index
    %32 = vector.load %arg8[%c0_19, %c0_20] : memref<8x4xf32, #tpu.memory_space<vmem>>, vector<8x4xf32>
    tpu.vector_store %arg8[%c0_19, %c0_20], %31 {strides = array<i32>} : memref<8x4xf32, #tpu.memory_space<vmem>>, vector<8x4xf32>,
    return
  }
  func.func @transform_0(%arg0: i32) -> (i32, i32) {
    %c0_i32 = arith.constant 0 : i32
    %c0_i32_0 = arith.constant 0 : i32
    return %arg0, %c0_i32 : i32, i32
  }
  func.func @transform_1(%arg0: i32) -> (i32, i32) {
    %c0_i32 = arith.constant 0 : i32
    %c0_i32_0 = arith.constant 0 : i32
    %c0_i32_1 = arith.constant 0 : i32
    return %c0_i32, %c0_i32_0 : i32, i32
  }
  func.func @transform_2(%arg0: i32) -> (i32, i32) {
    %c0_i32 = arith.constant 0 : i32
    %c0_i32_0 = arith.constant 0 : i32
    %c0_i32_1 = arith.constant 0 : i32
    return %c0_i32, %c0_i32_0 : i32, i32
  }
  func.func @transform_3(%arg0: i32) -> (i32, i32) {
    %c0_i32 = arith.constant 0 : i32
    %c0_i32_0 = arith.constant 0 : i32
    %c0_i32_1 = arith.constant 0 : i32
    return %c0_i32, %c0_i32_0 : i32, i32
  }
  func.func @transform_4(%arg0: i32) -> (i32, i32) {
    %c0_i32 = arith.constant 0 : i32
    %c0_i32_0 = arith.constant 0 : i32
    %c0_i32_1 = arith.constant 0 : i32
    return %c0_i32, %c0_i32_0 : i32, i32
  }
  func.func @transform_5(%arg0: i32) -> (i32, i32) {
    %c0_i32 = arith.constant 0 : i32
    %c0_i32_0 = arith.constant 0 : i32
    %c0_i32_1 = arith.constant 0 : i32
    return %c0_i32, %c0_i32_0 : i32, i32
  }
  func.func @transform_6(%arg0: i32) -> (i32, i32) {
    %c0_i32 = arith.constant 0 : i32
    %c0_i32_0 = arith.constant 0 : i32
    %c0_i32_1 = arith.constant 0 : i32
    return %c0_i32, %c0_i32_0 : i32, i32
  }
  func.func @transform_7(%arg0: i32) -> (i32, i32) {
    %c0_i32 = arith.constant 0 : i32
    %c0_i32_0 = arith.constant 0 : i32
    return %arg0, %c0_i32 : i32, i32
  }
}

</mosaic_0001>

<bundles_post_ra>
// kernel: tpu_custom_call.1
= control target key start
LH: loop header
LB: loop body
LE: loop exit
PB: predicated region body
PF: predicated region fallthrough
CT: control target
= control target key end

     0   :  { %12 = vsyncpa [#allocation3], 0  ;;  %s2573_s24 = smov [#allocation2]   ;;  %s2777_s0 = inlined_call_operand.vmem [shape: bf16[8,768], index: 0, kind: input, shape index: {}]   ;;  %s2778_s1 = inlined_call_operand.hbm [shape: bf16[768,512], index: 1, kind: input, shape index: {}]   ;;  %s2779_s2 = inlined_call_operand.vmem [shape: f32[1,512], index: 2, kind: input, shape index: {}]   ;;  %s2780_s3 = inlined_call_operand.vmem [shape: bf16[512,32], index: 3, kind: input, shape index: {}]   ;;  %s2781_s4 = inlined_call_operand.vmem [shape: f32[1,32], index: 4, kind: input, shape index: {}]   ;;  %s2782_s5 = inlined_call_operand.vmem [shape: bf16[32,4], index: 5, kind: input, shape index: {}]   ;;  %s2783_s6 = inlined_call_operand.vmem [shape: f32[1,4], index: 6, kind: input, shape index: {}]   ;;  %s2784_s7 = inlined_call_operand.vmem [shape: f32[8,4], index: 7, kind: output, shape index: {}]  }
   0x1   :  { %s20_s25 = sshll.u32 %s2573_s24, 4  ;;  %s21_s25 = int_to_ptr.vmem [resolvable:$true] %s20_s25 }
   0x2   :  { %s2559_s26 = scalar_lea.vmem %s21_s25, 24576  ;;  %p2564_p1 = scmp.lt.s32.totalorder %s21_s25, %s21_s25 }
   0x3   :  { %p2560_p0 = scmp.ne.s32.totalorder %s21_s25, %s2559_s26  ;;  %p2565_p2 = scmp.lt.s32.totalorder %s2559_s26, %s2559_s26 }
   0x5   :  { %p2566_p3 = por %p2565_p2, %p2564_p1 }
   0x7   :  { %p2567_p4 = pnand %p2566_p3, %p2560_p0 }
   0x9   :  { %2570 = shalt.err (!%p2567_p4)
}
   0xa   :  { %s2574_s27 = smov 256   ;;  %s2575_s28 = smov 16  }
   0xb   :  { %26 = dma.hbm_to_vmem [thread:$0]  %s2778_s1, 24576, %s21_s25, [#allocation3], %s2574_s27, %s2574_s27, %s2575_s28  }
   0xc   :  { %2571 = dma.done.wait [#allocation3], 24576  }
   0xd   :  { %2572 = vsyncadd [#allocation3], 4294942720  ;;  %v2219_v0 = vld [vmem:[#allocation2 + $0xe4] ss:$16 sps:$4 sm:$0xff]   ;;  %v2223_v2 = vld [vmem:[#allocation2 + $0xe0] ss:$16 sps:$4 sm:$0xff]  }
   0xe   :  { %v2221_v1 = vld [vmem:[#allocation2 + $0x2e4] ss:$16 sps:$4 sm:$0xff]   ;;  %1239 = vmatprep.subr.bf16.mxu0 %v2219_v0  ;;  %v2224_v3 = vld [vmem:[#allocation2 + $0x2e0] ss:$16 sps:$4 sm:$0xff]   ;;  %v42_v48 = vld [vmem:[%s2777_s0 + $0x8] sm:$0xff]  ;;  %vm2577_vm0 = vmmov 0  }
   0xf   :  { %1280 = vmatprep.subr.bf16.mxu1 %v2221_v1  ;;  %v2225_v4 = vld [vmem:[#allocation2 + $0xc4] ss:$16 sps:$4 sm:$0xff]   ;;  %1240 = vmatpush1.bf16.msra.mxu0 %v2223_v2  ;;  %v2229_v6 = vld [vmem:[#allocation2 + $0xc0] ss:$16 sps:$4 sm:$0xff]   ;;  %v2629_v51 = vcombine.high %v42_v48, %v42_v48  ;;  %vm1861_vm1 = vcmask 261120   ;;  %vm1905_vm2 = vcmask 31744  }
  0x10   :  { %1281 = vmatpush1.bf16.msra.mxu1 %v2224_v3  ;;  %v2227_v5 = vld [vmem:[#allocation2 + $0x2c4] ss:$16 sps:$4 sm:$0xff]   ;;  %1241 = vmatprep.subr.bf16.mxu0 %v2225_v4  ;;  %v2230_v7 = vld [vmem:[#allocation2 + $0x2c0] ss:$16 sps:$4 sm:$0xff]  }
  0x11   :  { %1282 = vmatprep.subr.bf16.mxu1 %v2227_v5  ;;  %v2231_v8 = vld [vmem:[#allocation2 + $0xa4] ss:$16 sps:$4 sm:$0xff]   ;;  %v2235_v10 = vld [vmem:[#allocation2 + $0xa0] ss:$16 sps:$4 sm:$0xff]   ;;  %1312 = vmatprep.mubr.bf16.mxu1 %v2629_v51  ;;  %v2324_v5 = vld [vmem:[#allocation2 + $0xec] ss:$16 sps:$4 sm:$0xff]  }
  0x12   :  { %v2233_v9 = vld [vmem:[#allocation2 + $0x2a4] ss:$16 sps:$4 sm:$0xff]   ;;  %v2236_v11 = vld [vmem:[#allocation2 + $0x2a0] ss:$16 sps:$4 sm:$0xff]  }
  0x13   :  { %1242 = vmatpush1.bf16.msra.mxu0 %v2229_v6  ;;  %v2237_v12 = vld [vmem:[#allocation2 + $0x84] ss:$16 sps:$4 sm:$0xff]   ;;  %v2241_v14 = vld [vmem:[#allocation2 + $0x80] ss:$16 sps:$4 sm:$0xff]  }
  0x14   :  { %1283 = vmatpush1.bf16.msra.mxu1 %v2230_v7  ;;  %1243 = vmatprep.subr.bf16.mxu0 %v2231_v8  ;;  %v2239_v13 = vld [vmem:[#allocation2 + $0x284] ss:$16 sps:$4 sm:$0xff]   ;;  %v2242_v15 = vld [vmem:[#allocation2 + $0x280] ss:$16 sps:$4 sm:$0xff]   ;;  %v2635_v7 = vcombine.low %v42_v48, %v42_v48 }
  0x15   :  { %1284 = vmatprep.subr.bf16.mxu1 %v2233_v9  ;;  %v2243_v16 = vld [vmem:[#allocation2 + $0x64] ss:$16 sps:$4 sm:$0xff]   ;;  %v2247_v18 = vld [vmem:[#allocation2 + $0x60] ss:$16 sps:$4 sm:$0xff]   ;;  %v2322_v9 = vld [vmem:[#allocation2 + $0xe8] ss:$16 sps:$4 sm:$0xff]  }
  0x16   :  { %v2245_v17 = vld [vmem:[#allocation2 + $0x264] ss:$16 sps:$4 sm:$0xff]   ;;  %v2248_v19 = vld [vmem:[#allocation2 + $0x260] ss:$16 sps:$4 sm:$0xff]  }
  0x17   :  { %1244 = vmatpush1.bf16.msra.mxu0 %v2235_v10  ;;  %v2249_v20 = vld [vmem:[#allocation2 + $0x44] ss:$16 sps:$4 sm:$0xff]   ;;  %v2253_v22 = vld [vmem:[#allocation2 + $0x40] ss:$16 sps:$4 sm:$0xff]  }
  0x18   :  { %1285 = vmatpush1.bf16.msra.mxu1 %v2236_v11  ;;  %1245 = vmatprep.subr.bf16.mxu0 %v2237_v12  ;;  %v2251_v21 = vld [vmem:[#allocation2 + $0x244] ss:$16 sps:$4 sm:$0xff]   ;;  %v2254_v23 = vld [vmem:[#allocation2 + $0x240] ss:$16 sps:$4 sm:$0xff]   ;;  %v2330_v11 = vld [vmem:[#allocation2 + $0xcc] ss:$16 sps:$4 sm:$0xff]  }
  0x19   :  { %1286 = vmatprep.subr.bf16.mxu1 %v2239_v13  ;;  %v2255_v24 = vld [vmem:[#allocation2 + $0x24] ss:$16 sps:$4 sm:$0xff]   ;;  %v2259_v26 = vld [vmem:[#allocation2 + $0x20] ss:$16 sps:$4 sm:$0xff]   ;;  %v2328_v13 = vld [vmem:[#allocation2 + $0xc8] ss:$16 sps:$4 sm:$0xff]  }
  0x1a   :  { %v2257_v25 = vld [vmem:[#allocation2 + $0x224] ss:$16 sps:$4 sm:$0xff]   ;;  %v2260_v27 = vld [vmem:[#allocation2 + $0x220] ss:$16 sps:$4 sm:$0xff]  }
  0x1b   :  { %1246 = vmatpush1.bf16.msra.mxu0 %v2241_v14  ;;  %v2261_v28 = vld [vmem:[#allocation2 + $0x4] ss:$16 sps:$4 sm:$0xff]   ;;  %v2265_v30 = vld [vmem:[#allocation2] ss:$16 sps:$4 sm:$0xff]  }
  0x1c   :  { %1287 = vmatpush1.bf16.msra.mxu1 %v2242_v15  ;;  %1247 = vmatprep.subr.bf16.mxu0 %v2243_v16  ;;  %v2263_v29 = vld [vmem:[#allocation2 + $0x204] ss:$16 sps:$4 sm:$0xff]   ;;  %v2266_v31 = vld [vmem:[#allocation2 + $0x200] ss:$16 sps:$4 sm:$0xff]   ;;  %v2336_v15 = vld [vmem:[#allocation2 + $0xac] ss:$16 sps:$4 sm:$0xff]  }
  0x1d   :  { %1288 = vmatprep.subr.bf16.mxu1 %v2245_v17  ;;  %v2267_v32 = vld [vmem:[#allocation2 + $0x1e4] ss:$16 sps:$4 sm:$0xff]   ;;  %v2271_v34 = vld [vmem:[#allocation2 + $0x1e0] ss:$16 sps:$4 sm:$0xff]   ;;  %v2334_v17 = vld [vmem:[#allocation2 + $0xa8] ss:$16 sps:$4 sm:$0xff]  }
  0x1e   :  { %v2269_v33 = vld [vmem:[#allocation2 + $0x3e4] ss:$16 sps:$4 sm:$0xff]   ;;  %v2272_v35 = vld [vmem:[#allocation2 + $0x3e0] ss:$16 sps:$4 sm:$0xff]  }
  0x1f   :  { %1248 = vmatpush1.bf16.msra.mxu0 %v2247_v18  ;;  %v2273_v36 = vld [vmem:[#allocation2 + $0x1c4] ss:$16 sps:$4 sm:$0xff]   ;;  %v2277_v38 = vld [vmem:[#allocation2 + $0x1c0] ss:$16 sps:$4 sm:$0xff]  }
  0x20   :  { %1289 = vmatpush1.bf16.msra.mxu1 %v2248_v19  ;;  %1249 = vmatprep.subr.bf16.mxu0 %v2249_v20  ;;  %v2275_v37 = vld [vmem:[#allocation2 + $0x3c4] ss:$16 sps:$4 sm:$0xff]   ;;  %v2278_v39 = vld [vmem:[#allocation2 + $0x3c0] ss:$16 sps:$4 sm:$0xff]   ;;  %v2342_v19 = vld [vmem:[#allocation2 + $0x8c] ss:$16 sps:$4 sm:$0xff]  }
  0x21   :  { %1290 = vmatprep.subr.bf16.mxu1 %v2251_v21  ;;  %v2279_v40 = vld [vmem:[#allocation2 + $0x1a4] ss:$16 sps:$4 sm:$0xff]   ;;  %v2283_v42 = vld [vmem:[#allocation2 + $0x1a0] ss:$16 sps:$4 sm:$0xff]   ;;  %v2340_v21 = vld [vmem:[#allocation2 + $0x88] ss:$16 sps:$4 sm:$0xff]  }
  0x22   :  { %v2281_v41 = vld [vmem:[#allocation2 + $0x3a4] ss:$16 sps:$4 sm:$0xff]   ;;  %v2284_v43 = vld [vmem:[#allocation2 + $0x3a0] ss:$16 sps:$4 sm:$0xff]  }
  0x23   :  { %1250 = vmatpush1.bf16.msra.mxu0 %v2253_v22  ;;  %v2285_v44 = vld [vmem:[#allocation2 + $0x184] ss:$16 sps:$4 sm:$0xff]   ;;  %v2289_v49 = vld [vmem:[#allocation2 + $0x180] ss:$16 sps:$4 sm:$0xff]  }
  0x24   :  { %1291 = vmatpush1.bf16.msra.mxu1 %v2254_v23  ;;  %1251 = vmatprep.subr.bf16.mxu0 %v2255_v24  ;;  %v2287_v45 = vld [vmem:[#allocation2 + $0x384] ss:$16 sps:$4 sm:$0xff]   ;;  %v2290_v50 = vld [vmem:[#allocation2 + $0x380] ss:$16 sps:$4 sm:$0xff]   ;;  %v2348_v23 = vld [vmem:[#allocation2 + $0x6c] ss:$16 sps:$4 sm:$0xff]  }
  0x25   :  { %1292 = vmatprep.subr.bf16.mxu1 %v2257_v25  ;;  %v41_v46 = vld [vmem:[%s2777_s0] sm:$0xff]  ;;  %v2346_v25 = vld [vmem:[#allocation2 + $0x68] ss:$16 sps:$4 sm:$0xff]  }
  0x26   :  { %v2624_v47 = vcombine.high %v41_v46, %v41_v46  ;;  %v2291_v52 = vld [vmem:[#allocation2 + $0x164] ss:$16 sps:$4 sm:$0xff]   ;;  %v2295_v54 = vld [vmem:[#allocation2 + $0x160] ss:$16 sps:$4 sm:$0xff]   ;;  %v2633_v6 = vcombine.low %v41_v46, %v41_v46 }
  0x27   :  { %1252 = vmatpush1.bf16.msra.mxu0 %v2259_v26  ;;  %v2293_v53 = vld [vmem:[#allocation2 + $0x364] ss:$16 sps:$4 sm:$0xff]   ;;  %v2296_v55 = vld [vmem:[#allocation2 + $0x360] ss:$16 sps:$4 sm:$0xff]  }
  0x28   :  { %1293 = vmatpush1.bf16.msra.mxu1 %v2260_v27  ;;  %1253 = vmatprep.subr.bf16.mxu0 %v2261_v28  ;;  %v2297_v56 = vld [vmem:[#allocation2 + $0x144] ss:$16 sps:$4 sm:$0xff]   ;;  %v2301_v58 = vld [vmem:[#allocation2 + $0x140] ss:$16 sps:$4 sm:$0xff]   ;;  %v2354_v27 = vld [vmem:[#allocation2 + $0x4c] ss:$16 sps:$4 sm:$0xff]  }
  0x29   :  { %1294 = vmatprep.subr.bf16.mxu1 %v2263_v29  ;;  %1271 = vmatprep.mubr.bf16.mxu0 %v2624_v47  ;;  %v2299_v57 = vld [vmem:[#allocation2 + $0x344] ss:$16 sps:$4 sm:$0xff]   ;;  %v2302_v59 = vld [vmem:[#allocation2 + $0x340] ss:$16 sps:$4 sm:$0xff]   ;;  %v2352_v29 = vld [vmem:[#allocation2 + $0x48] ss:$16 sps:$4 sm:$0xff]  }
  0x2a   :  { %v2303_v60 = vld [vmem:[#allocation2 + $0x124] ss:$16 sps:$4 sm:$0xff]   ;;  %v2307_v62 = vld [vmem:[#allocation2 + $0x120] ss:$16 sps:$4 sm:$0xff]  }
  0x2b   :  { %1254 = vmatpush1.bf16.msra.mxu0 %v2265_v30  ;;  %v2305_v61 = vld [vmem:[#allocation2 + $0x324] ss:$16 sps:$4 sm:$0xff]   ;;  %v2308_v63 = vld [vmem:[#allocation2 + $0x320] ss:$16 sps:$4 sm:$0xff]  }
  0x2c   :  { %1295 = vmatpush1.bf16.msra.mxu1 %v2266_v31  ;;  %1255 = vmatprep.subr.bf16.mxu0 %v2267_v32  ;;  %v2309_v0 = vld [vmem:[#allocation2 + $0x104] ss:$16 sps:$4 sm:$0xff]   ;;  %v2313_v2 = vld [vmem:[#allocation2 + $0x100] ss:$16 sps:$4 sm:$0xff]   ;;  %v2360_v31 = vld [vmem:[#allocation2 + $0x2c] ss:$16 sps:$4 sm:$0xff]  }
  0x2d   :  { %1296 = vmatprep.subr.bf16.mxu1 %v2269_v33  ;;  %v2311_v1 = vld [vmem:[#allocation2 + $0x304] ss:$16 sps:$4 sm:$0xff]   ;;  %v2314_v3 = vld [vmem:[#allocation2 + $0x300] ss:$16 sps:$4 sm:$0xff]  }
  0x2e   :  { %v2321_v4 = vld [vmem:[#allocation2 + $0x4e4] ss:$16 sps:$4 sm:$0xff]   ;;  %v2319_v8 = vld [vmem:[#allocation2 + $0x4e0] ss:$16 sps:$4 sm:$0xff]  }
  0x2f   :  { %1256 = vmatpush2.bf16.msra.mxu0 %v2271_v34  ;;  %v2327_v10 = vld [vmem:[#allocation2 + $0x4c4] ss:$16 sps:$4 sm:$0xff]   ;;  %v2325_v12 = vld [vmem:[#allocation2 + $0x4c0] ss:$16 sps:$4 sm:$0xff]  }
  0x30   :  { %1297 = vmatpush2.bf16.msra.mxu1 %v2272_v35  ;;  %1257 = vmatprep.subr.bf16.mxu0 %v2273_v36  ;;  %v2333_v14 = vld [vmem:[#allocation2 + $0x4a4] ss:$16 sps:$4 sm:$0xff]   ;;  %v2331_v16 = vld [vmem:[#allocation2 + $0x4a0] ss:$16 sps:$4 sm:$0xff]   ;;  %v2358_v35 = vld [vmem:[#allocation2 + $0x28] ss:$16 sps:$4 sm:$0xff]  }
  0x31   :  { %1298 = vmatprep.subr.bf16.mxu1 %v2275_v37  ;;  %v2339_v18 = vld [vmem:[#allocation2 + $0x484] ss:$16 sps:$4 sm:$0xff]   ;;  %v2337_v20 = vld [vmem:[#allocation2 + $0x480] ss:$16 sps:$4 sm:$0xff]   ;;  %v2366_v37 = vld [vmem:[#allocation2 + $0xc] ss:$16 sps:$4 sm:$0xff]  }
  0x32   :  { %v2345_v22 = vld [vmem:[#allocation2 + $0x464] ss:$16 sps:$4 sm:$0xff]   ;;  %v2343_v24 = vld [vmem:[#allocation2 + $0x460] ss:$16 sps:$4 sm:$0xff]  }
  0x33   :  { %1258 = vmatpush2.bf16.msra.mxu0 %v2277_v38  ;;  %v2351_v26 = vld [vmem:[#allocation2 + $0x444] ss:$16 sps:$4 sm:$0xff]   ;;  %v2349_v28 = vld [vmem:[#allocation2 + $0x440] ss:$16 sps:$4 sm:$0xff]  }
  0x34   :  { %1299 = vmatpush2.bf16.msra.mxu1 %v2278_v39  ;;  %1259 = vmatprep.subr.bf16.mxu0 %v2279_v40  ;;  %v2357_v30 = vld [vmem:[#allocation2 + $0x424] ss:$16 sps:$4 sm:$0xff]   ;;  %v2355_v33 = vld [vmem:[#allocation2 + $0x420] ss:$16 sps:$4 sm:$0xff]   ;;  %v2364_v39 = vld [vmem:[#allocation2 + $0x8] ss:$16 sps:$4 sm:$0xff]  }
  0x35   :  { %1300 = vmatprep.subr.bf16.mxu1 %v2281_v41  ;;  %v2643_v32 = vld [vmem:[%s2777_s0 + $0x10] sm:$0xff]  ;;  %v2372_v41 = vld [vmem:[#allocation2 + $0x1ec] ss:$16 sps:$4 sm:$0xff]  }
  0x36   :  { %v2647_v34 = vcombine.high %v2643_v32, %v2643_v32  ;;  %v2363_v36 = vld [vmem:[#allocation2 + $0x404] ss:$16 sps:$4 sm:$0xff]   ;;  %v2361_v38 = vld [vmem:[#allocation2 + $0x400] ss:$16 sps:$4 sm:$0xff]  }
  0x37   :  { %1260 = vmatpush2.bf16.msra.mxu0 %v2283_v42  ;;  %v2369_v40 = vld [vmem:[#allocation2 + $0x5e4] ss:$16 sps:$4 sm:$0xff]   ;;  %v2367_v42 = vld [vmem:[#allocation2 + $0x5e0] ss:$16 sps:$4 sm:$0xff]  }
  0x38   :  { %1301 = vmatpush2.bf16.msra.mxu1 %v2284_v43  ;;  %1261 = vmatprep.subr.bf16.mxu0 %v2285_v44  ;;  %v2370_v43 = vld [vmem:[#allocation2 + $0x1e8] ss:$16 sps:$4 sm:$0xff]   ;;  %v2375_v44 = vld [vmem:[#allocation2 + $0x5c4] ss:$16 sps:$4 sm:$0xff]   ;;  %v2373_v46 = vld [vmem:[#allocation2 + $0x5c0] ss:$16 sps:$4 sm:$0xff]  }
  0x39   :  { %1302 = vmatprep.subr.bf16.mxu1 %v2287_v45  ;;  %v2378_v45 = vld [vmem:[#allocation2 + $0x1cc] ss:$16 sps:$4 sm:$0xff]   ;;  %v2381_v48 = vld [vmem:[#allocation2 + $0x5a4] ss:$16 sps:$4 sm:$0xff]  }
  0x3b   :  { %1262 = vmatpush2.bf16.msra.mxu0 %v2289_v49  ;;  %v2384_v49 = vld [vmem:[#allocation2 + $0x1ac] ss:$16 sps:$4 sm:$0xff]  }
  0x3c   :  { %1303 = vmatpush2.bf16.msra.mxu1 %v2290_v50  ;;  %1263 = vmatprep.subr.bf16.mxu0 %v2291_v52  ;;  %v2379_v50 = vld [vmem:[#allocation2 + $0x5a0] ss:$16 sps:$4 sm:$0xff]   ;;  %v2382_v52 = vld [vmem:[#allocation2 + $0x1a8] ss:$16 sps:$4 sm:$0xff]  }
  0x3d   :  { %1304 = vmatprep.subr.bf16.mxu1 %v2293_v53  ;;  %v2387_v53 = vld [vmem:[#allocation2 + $0x584] ss:$16 sps:$4 sm:$0xff]  }
  0x3f   :  { %1264 = vmatpush2.bf16.msra.mxu0 %v2295_v54  ;;  %v2390_v54 = vld [vmem:[#allocation2 + $0x18c] ss:$16 sps:$4 sm:$0xff]  }
  0x40   :  { %1305 = vmatpush2.bf16.msra.mxu1 %v2296_v55  ;;  %1265 = vmatprep.subr.bf16.mxu0 %v2297_v56  ;;  %v2385_v55 = vld [vmem:[#allocation2 + $0x580] ss:$16 sps:$4 sm:$0xff]   ;;  %v2388_v56 = vld [vmem:[#allocation2 + $0x188] ss:$16 sps:$4 sm:$0xff]  }
  0x41   :  { %1306 = vmatprep.subr.bf16.mxu1 %v2299_v57  ;;  %v2393_v57 = vld [vmem:[#allocation2 + $0x564] ss:$16 sps:$4 sm:$0xff]  }
  0x43   :  { %1266 = vmatpush2.bf16.msra.mxu0 %v2301_v58  ;;  %v2396_v58 = vld [vmem:[#allocation2 + $0x16c] ss:$16 sps:$4 sm:$0xff]  }
  0x44   :  { %1307 = vmatpush2.bf16.msra.mxu1 %v2302_v59  ;;  %1267 = vmatprep.subr.bf16.mxu0 %v2303_v60  ;;  %v2391_v59 = vld [vmem:[#allocation2 + $0x560] ss:$16 sps:$4 sm:$0xff]   ;;  %v2394_v60 = vld [vmem:[#allocation2 + $0x168] ss:$16 sps:$4 sm:$0xff]  }
  0x45   :  { %1308 = vmatprep.subr.bf16.mxu1 %v2305_v61  ;;  %v2399_v61 = vld [vmem:[#allocation2 + $0x544] ss:$16 sps:$4 sm:$0xff]  }
  0x47   :  { %1268 = vmatpush2.bf16.msra.mxu0 %v2307_v62  ;;  %v2402_v62 = vld [vmem:[#allocation2 + $0x14c] ss:$16 sps:$4 sm:$0xff]  }
  0x48   :  { %1309 = vmatpush2.bf16.msra.mxu1 %v2308_v63  ;;  %1269 = vmatprep.subr.bf16.mxu0 %v2309_v0  ;;  %v2397_v63 = vld [vmem:[#allocation2 + $0x540] ss:$16 sps:$4 sm:$0xff]   ;;  %v2400_v0 = vld [vmem:[#allocation2 + $0x148] ss:$16 sps:$4 sm:$0xff]  }
  0x49   :  { %1310 = vmatprep.subr.bf16.mxu1 %v2311_v1  ;;  %v2405_v1 = vld [vmem:[#allocation2 + $0x524] ss:$16 sps:$4 sm:$0xff]  }
  0x4b   :  { %1270 = vmatpush2.bf16.msra.mxu0 %v2313_v2  ;;  %v2408_v2 = vld [vmem:[#allocation2 + $0x12c] ss:$16 sps:$4 sm:$0xff]  }
  0x4c   :  { %1311 = vmatpush2.bf16.msra.mxu1 %v2314_v3  ;;  %1321 = vmatprep.subr.bf16.mxu0 %v2321_v4  ;;  %v2403_v3 = vld [vmem:[#allocation2 + $0x520] ss:$16 sps:$4 sm:$0xff]   ;;  %v2406_v4 = vld [vmem:[#allocation2 + $0x128] ss:$16 sps:$4 sm:$0xff]  }
  0x4d   :  { %1362 = vmatprep.subr.bf16.mxu1 %v2324_v5  ;;  %v2411_v5 = vld [vmem:[#allocation2 + $0x504] ss:$16 sps:$4 sm:$0xff]  }
  0x4e   :  { %1272 = vmatmul.mubr.bf16.vlgmr.msra.gmra.mxu0 %v2633_v6 }
  0x4f   :  { %1313 = vmatmul.mubr.bf16.vlgmr.msra.gmra.mxu1 %v2635_v7  ;;  %1322 = vmatpush1.bf16.msra.mxu0 %v2319_v8  ;;  %v2414_v8 = vld [vmem:[#allocation2 + $0x10c] ss:$16 sps:$4 sm:$0xff]  }
  0x50   :  { %1363 = vmatpush1.bf16.msra.mxu1 %v2322_v9  ;;  %1323 = vmatprep.subr.bf16.mxu0 %v2327_v10  ;;  %v2409_v9 = vld [vmem:[#allocation2 + $0x500] ss:$16 sps:$4 sm:$0xff]   ;;  %v2412_v10 = vld [vmem:[#allocation2 + $0x108] ss:$16 sps:$4 sm:$0xff]  }
  0x51   :  { %1364 = vmatprep.subr.bf16.mxu1 %v2330_v11  ;;  %1394 = vmatprep.mubr.bf16.mxu1 %v2624_v47  ;;  %v2376_v47 = vld [vmem:[#allocation2 + $0x1c8] ss:$16 sps:$4 sm:$0xff]   ;;  %v2419_v11 = vld [vmem:[#allocation2 + $0x2ec] ss:$16 sps:$4 sm:$0xff]  }
  0x52   :  { %1353 = vmatprep.mubr.bf16.mxu0 %v2647_v34 }
  0x53   :  { %1324 = vmatpush1.bf16.msra.mxu0 %v2325_v12  ;;  %v2422_v12 = vld [vmem:[#allocation2 + $0x4ec] ss:$16 sps:$4 sm:$0xff]  }
  0x54   :  { %1365 = vmatpush1.bf16.msra.mxu1 %v2328_v13  ;;  %1325 = vmatprep.subr.bf16.mxu0 %v2333_v14  ;;  %v2652_v13 = vcombine.low %v2643_v32, %v2643_v32  ;;  %v2417_v14 = vld [vmem:[#allocation2 + $0x2e8] ss:$16 sps:$4 sm:$0xff]  }
  0x55   :  { %1366 = vmatprep.subr.bf16.mxu1 %v2336_v15  ;;  %v2420_v15 = vld [vmem:[#allocation2 + $0x4e8] ss:$16 sps:$4 sm:$0xff]  }
  0x56   :  { %v2447_v32 = vld [vmem:[#allocation2 + $0x248] ss:$16 sps:$4 sm:$0xff]  }
  0x57   :  { %1326 = vmatpush1.bf16.msra.mxu0 %v2331_v16  ;;  %v2425_v16 = vld [vmem:[#allocation2 + $0x2cc] ss:$16 sps:$4 sm:$0xff]  }
  0x58   :  { %1367 = vmatpush1.bf16.msra.mxu1 %v2334_v17  ;;  %1327 = vmatprep.subr.bf16.mxu0 %v2339_v18  ;;  %v2428_v17 = vld [vmem:[#allocation2 + $0x4cc] ss:$16 sps:$4 sm:$0xff]   ;;  %v2423_v18 = vld [vmem:[#allocation2 + $0x2c8] ss:$16 sps:$4 sm:$0xff]  }
  0x59   :  { %1368 = vmatprep.subr.bf16.mxu1 %v2342_v19  ;;  %v2426_v19 = vld [vmem:[#allocation2 + $0x4c8] ss:$16 sps:$4 sm:$0xff]  }
  0x5b   :  { %1328 = vmatpush1.bf16.msra.mxu0 %v2337_v20  ;;  %v2431_v20 = vld [vmem:[#allocation2 + $0x2ac] ss:$16 sps:$4 sm:$0xff]  }
  0x5c   :  { %1369 = vmatpush1.bf16.msra.mxu1 %v2340_v21  ;;  %1329 = vmatprep.subr.bf16.mxu0 %v2345_v22  ;;  %v2434_v21 = vld [vmem:[#allocation2 + $0x4ac] ss:$16 sps:$4 sm:$0xff]   ;;  %v2429_v22 = vld [vmem:[#allocation2 + $0x2a8] ss:$16 sps:$4 sm:$0xff]  }
  0x5d   :  { %1370 = vmatprep.subr.bf16.mxu1 %v2348_v23  ;;  %v2432_v23 = vld [vmem:[#allocation2 + $0x4a8] ss:$16 sps:$4 sm:$0xff]  }
  0x5f   :  { %1330 = vmatpush1.bf16.msra.mxu0 %v2343_v24  ;;  %v2437_v24 = vld [vmem:[#allocation2 + $0x28c] ss:$16 sps:$4 sm:$0xff]  }
  0x60   :  { %1371 = vmatpush1.bf16.msra.mxu1 %v2346_v25  ;;  %1331 = vmatprep.subr.bf16.mxu0 %v2351_v26  ;;  %v2440_v25 = vld [vmem:[#allocation2 + $0x48c] ss:$16 sps:$4 sm:$0xff]   ;;  %v2435_v26 = vld [vmem:[#allocation2 + $0x288] ss:$16 sps:$4 sm:$0xff]  }
  0x61   :  { %1372 = vmatprep.subr.bf16.mxu1 %v2354_v27  ;;  %v2443_v27 = vld [vmem:[#allocation2 + $0x26c] ss:$16 sps:$4 sm:$0xff]  }
  0x63   :  { %1332 = vmatpush1.bf16.msra.mxu0 %v2349_v28  ;;  %v2446_v28 = vld [vmem:[#allocation2 + $0x46c] ss:$16 sps:$4 sm:$0xff]  }
  0x64   :  { %1373 = vmatpush1.bf16.msra.mxu1 %v2352_v29  ;;  %1333 = vmatprep.subr.bf16.mxu0 %v2357_v30  ;;  %v2441_v29 = vld [vmem:[#allocation2 + $0x268] ss:$16 sps:$4 sm:$0xff]  }
  0x65   :  { %1374 = vmatprep.subr.bf16.mxu1 %v2360_v31  ;;  %v2444_v30 = vld [vmem:[#allocation2 + $0x468] ss:$16 sps:$4 sm:$0xff]   ;;  %v2449_v31 = vld [vmem:[#allocation2 + $0x24c] ss:$16 sps:$4 sm:$0xff]  }
  0x67   :  { %1334 = vmatpush1.bf16.msra.mxu0 %v2355_v33  ;;  %v2450_v33 = vld [vmem:[#allocation2 + $0x448] ss:$16 sps:$4 sm:$0xff]  }
  0x68   :  { %1375 = vmatpush1.bf16.msra.mxu1 %v2358_v35  ;;  %1335 = vmatprep.subr.bf16.mxu0 %v2363_v36  ;;  %v2458_v35 = vld [vmem:[#allocation2 + $0x42c] ss:$16 sps:$4 sm:$0xff]   ;;  %v2453_v36 = vld [vmem:[#allocation2 + $0x228] ss:$16 sps:$4 sm:$0xff]  }
  0x69   :  { %1376 = vmatprep.subr.bf16.mxu1 %v2366_v37  ;;  %v2456_v37 = vld [vmem:[#allocation2 + $0x428] ss:$16 sps:$4 sm:$0xff]  }
  0x6b   :  { %1336 = vmatpush1.bf16.msra.mxu0 %v2361_v38  ;;  %v2461_v38 = vld [vmem:[#allocation2 + $0x20c] ss:$16 sps:$4 sm:$0xff]  }
  0x6c   :  { %1377 = vmatpush1.bf16.msra.mxu1 %v2364_v39  ;;  %1337 = vmatprep.subr.bf16.mxu0 %v2369_v40  ;;  %v2464_v39 = vld [vmem:[#allocation2 + $0x40c] ss:$16 sps:$4 sm:$0xff]   ;;  %v2459_v40 = vld [vmem:[#allocation2 + $0x208] ss:$16 sps:$4 sm:$0xff]  }
  0x6d   :  { %1378 = vmatprep.subr.bf16.mxu1 %v2372_v41  ;;  %v2462_v41 = vld [vmem:[#allocation2 + $0x408] ss:$16 sps:$4 sm:$0xff]  }
  0x6f   :  { %1338 = vmatpush2.bf16.msra.mxu0 %v2367_v42  ;;  %v2467_v42 = vld [vmem:[#allocation2 + $0x3ec] ss:$16 sps:$4 sm:$0xff]  }
  0x70   :  { %1379 = vmatpush2.bf16.msra.mxu1 %v2370_v43  ;;  %1339 = vmatprep.subr.bf16.mxu0 %v2375_v44  ;;  %v2470_v43 = vld [vmem:[#allocation2 + $0x5ec] ss:$16 sps:$4 sm:$0xff]   ;;  %v2465_v44 = vld [vmem:[#allocation2 + $0x3e8] ss:$16 sps:$4 sm:$0xff]  }
  0x71   :  { %1380 = vmatprep.subr.bf16.mxu1 %v2378_v45  ;;  %v2468_v45 = vld [vmem:[#allocation2 + $0x5e8] ss:$16 sps:$4 sm:$0xff]  }
  0x73   :  { %1340 = vmatpush2.bf16.msra.mxu0 %v2373_v46  ;;  %v2473_v46 = vld [vmem:[#allocation2 + $0x3cc] ss:$16 sps:$4 sm:$0xff]  }
  0x74   :  { %1381 = vmatpush2.bf16.msra.mxu1 %v2376_v47  ;;  %1341 = vmatprep.subr.bf16.mxu0 %v2381_v48  ;;  %v2476_v47 = vld [vmem:[#allocation2 + $0x5cc] ss:$16 sps:$4 sm:$0xff]   ;;  %v2471_v48 = vld [vmem:[#allocation2 + $0x3c8] ss:$16 sps:$4 sm:$0xff]  }
  0x75   :  { %1382 = vmatprep.subr.bf16.mxu1 %v2384_v49  ;;  %v2474_v49 = vld [vmem:[#allocation2 + $0x5c8] ss:$16 sps:$4 sm:$0xff]  }
  0x77   :  { %1342 = vmatpush2.bf16.msra.mxu0 %v2379_v50  ;;  %v2479_v50 = vld [vmem:[#allocation2 + $0x3ac] ss:$16 sps:$4 sm:$0xff]  }
  0x78   :  { %1383 = vmatpush2.bf16.msra.mxu1 %v2382_v52  ;;  %1343 = vmatprep.subr.bf16.mxu0 %v2387_v53  ;;  %v2482_v52 = vld [vmem:[#allocation2 + $0x5ac] ss:$16 sps:$4 sm:$0xff]   ;;  %v2477_v53 = vld [vmem:[#allocation2 + $0x3a8] ss:$16 sps:$4 sm:$0xff]  }
  0x79   :  { %1384 = vmatprep.subr.bf16.mxu1 %v2390_v54  ;;  %v2480_v54 = vld [vmem:[#allocation2 + $0x5a8] ss:$16 sps:$4 sm:$0xff]  }
  0x7b   :  { %1344 = vmatpush2.bf16.msra.mxu0 %v2385_v55  ;;  %v2485_v55 = vld [vmem:[#allocation2 + $0x38c] ss:$16 sps:$4 sm:$0xff]  }
  0x7c   :  { %1385 = vmatpush2.bf16.msra.mxu1 %v2388_v56  ;;  %1345 = vmatprep.subr.bf16.mxu0 %v2393_v57  ;;  %v2488_v56 = vld [vmem:[#allocation2 + $0x58c] ss:$16 sps:$4 sm:$0xff]   ;;  %v2483_v57 = vld [vmem:[#allocation2 + $0x388] ss:$16 sps:$4 sm:$0xff]  }
  0x7d   :  { %1386 = vmatprep.subr.bf16.mxu1 %v2396_v58  ;;  %v2486_v58 = vld [vmem:[#allocation2 + $0x588] ss:$16 sps:$4 sm:$0xff]  }
  0x7f   :  { %1346 = vmatpush2.bf16.msra.mxu0 %v2391_v59  ;;  %v2491_v59 = vld [vmem:[#allocation2 + $0x36c] ss:$16 sps:$4 sm:$0xff]  }
  0x80   :  { %1387 = vmatpush2.bf16.msra.mxu1 %v2394_v60  ;;  %1347 = vmatprep.subr.bf16.mxu0 %v2399_v61  ;;  %v2494_v60 = vld [vmem:[#allocation2 + $0x56c] ss:$16 sps:$4 sm:$0xff]   ;;  %v2489_v61 = vld [vmem:[#allocation2 + $0x368] ss:$16 sps:$4 sm:$0xff]  }
  0x81   :  { %1388 = vmatprep.subr.bf16.mxu1 %v2402_v62  ;;  %v2492_v62 = vld [vmem:[#allocation2 + $0x568] ss:$16 sps:$4 sm:$0xff]  }
  0x83   :  { %1348 = vmatpush2.bf16.msra.mxu0 %v2397_v63  ;;  %v2497_v63 = vld [vmem:[#allocation2 + $0x34c] ss:$16 sps:$4 sm:$0xff]  }
  0x84   :  { %1389 = vmatpush2.bf16.msra.mxu1 %v2400_v0  ;;  %1349 = vmatprep.subr.bf16.mxu0 %v2405_v1  ;;  %v2500_v0 = vld [vmem:[#allocation2 + $0x54c] ss:$16 sps:$4 sm:$0xff]   ;;  %v2495_v1 = vld [vmem:[#allocation2 + $0x348] ss:$16 sps:$4 sm:$0xff]  }
  0x85   :  { %1390 = vmatprep.subr.bf16.mxu1 %v2408_v2  ;;  %v2498_v2 = vld [vmem:[#allocation2 + $0x548] ss:$16 sps:$4 sm:$0xff]  }
  0x87   :  { %1350 = vmatpush2.bf16.msra.mxu0 %v2403_v3  ;;  %v2503_v3 = vld [vmem:[#allocation2 + $0x32c] ss:$16 sps:$4 sm:$0xff]  }
  0x88   :  { %1391 = vmatpush2.bf16.msra.mxu1 %v2406_v4  ;;  %1351 = vmatprep.subr.bf16.mxu0 %v2411_v5  ;;  %v2506_v4 = vld [vmem:[#allocation2 + $0x52c] ss:$16 sps:$4 sm:$0xff]   ;;  %v2501_v5 = vld [vmem:[#allocation2 + $0x328] ss:$16 sps:$4 sm:$0xff]  }
  0x89   :  { %1392 = vmatprep.subr.bf16.mxu1 %v2414_v8  ;;  %v2504_v8 = vld [vmem:[#allocation2 + $0x528] ss:$16 sps:$4 sm:$0xff]  }
  0x8b   :  { %1352 = vmatpush2.bf16.msra.mxu0 %v2409_v9  ;;  %v2509_v9 = vld [vmem:[#allocation2 + $0x30c] ss:$16 sps:$4 sm:$0xff]  }
  0x8c   :  { %1393 = vmatpush2.bf16.msra.mxu1 %v2412_v10  ;;  %1403 = vmatprep.subr.bf16.mxu0 %v2419_v11  ;;  %v2512_v10 = vld [vmem:[#allocation2 + $0x50c] ss:$16 sps:$4 sm:$0xff]   ;;  %v2507_v11 = vld [vmem:[#allocation2 + $0x308] ss:$16 sps:$4 sm:$0xff]  }
  0x8d   :  { %1444 = vmatprep.subr.bf16.mxu1 %v2422_v12  ;;  %v2510_v12 = vld [vmem:[#allocation2 + $0x508] ss:$16 sps:$4 sm:$0xff]  }
  0x8e   :  { %1354 = vmatmul.mubr.bf16.vlgmr.msra.gmra.mxu0 %v2652_v13 }
  0x8f   :  { %1395 = vmatmul.mubr.bf16.vlgmr.msra.gmra.mxu1 %v2633_v6  ;;  %1404 = vmatpush1.bf16.msra.mxu0 %v2417_v14  ;;  %v2438_v6 = vld [vmem:[#allocation2 + $0x488] ss:$16 sps:$4 sm:$0xff]  }
  0x90   :  { %1445 = vmatpush1.bf16.msra.mxu1 %v2420_v15  ;;  %1405 = vmatprep.subr.bf16.mxu0 %v2425_v16  ;;  %v2513_v14 = vld [vmem:[%s2780_s3 + $0x78] sm:$0xff]   ;;  %v2515_v16 = vld [vmem:[%s2780_s3 + $0x70] sm:$0xff]  }
  0x91   :  { %1446 = vmatprep.subr.bf16.mxu1 %v2428_v17  ;;  %1435 = vmatprep.mubr.bf16.mxu0 %v2629_v51  ;;  %v2452_v51 = vld [vmem:[#allocation2 + $0x44c] ss:$16 sps:$4 sm:$0xff]   ;;  %v2516_v17 = vld [vmem:[%s2780_s3 + $0x30] sm:$0xff]  }
  0x92   :  { %1476 = vmatprep.mubr.bf16.mxu1 %v2647_v34  ;;  %v2455_v34 = vld [vmem:[#allocation2 + $0x22c] ss:$16 sps:$4 sm:$0xff]  }
  0x93   :  { %1406 = vmatpush1.bf16.msra.mxu0 %v2423_v18  ;;  %v2514_v15 = vld [vmem:[%s2780_s3 + $0x38] sm:$0xff]   ;;  %v2517_v18 = vld [vmem:[%s2780_s3 + $0x68] sm:$0xff]  }
  0x94   :  { %1447 = vmatpush1.bf16.msra.mxu1 %v2426_v19  ;;  %1407 = vmatprep.subr.bf16.mxu0 %v2431_v20  ;;  %v2518_v19 = vld [vmem:[%s2780_s3 + $0x28] sm:$0xff]   ;;  %v2521_v20 = vld [vmem:[%s2780_s3 + $0x58] sm:$0xff]  }
  0x95   :  { %1448 = vmatprep.subr.bf16.mxu1 %v2434_v21  ;;  %v2529_v21 = vld [vmem:[%s2780_s3 + $0xf8] sm:$0xff]  }
  0x97   :  { %1408 = vmatpush1.bf16.msra.mxu0 %v2429_v22  ;;  %v2530_v22 = vld [vmem:[%s2780_s3 + $0xb8] sm:$0xff]  }
  0x98   :  { %1449 = vmatpush1.bf16.msra.mxu1 %v2432_v23  ;;  %1409 = vmatprep.subr.bf16.mxu0 %v2437_v24  ;;  %v2531_v23 = vld [vmem:[%s2780_s3 + $0xf0] sm:$0xff]   ;;  %v2522_v24 = vld [vmem:[%s2780_s3 + $0x18] sm:$0xff]  }
  0x99   :  { %1450 = vmatprep.subr.bf16.mxu1 %v2440_v25  ;;  %v2532_v25 = vld [vmem:[%s2780_s3 + $0xb0] sm:$0xff]  }
  0x9b   :  { %1410 = vmatpush1.bf16.msra.mxu0 %v2435_v26  ;;  %v2523_v26 = vld [vmem:[%s2780_s3 + $0x50] sm:$0xff]  }
  0x9c   :  { %1451 = vmatpush1.bf16.msra.mxu1 %v2438_v6  ;;  %1411 = vmatprep.subr.bf16.mxu0 %v2443_v27  ;;  %v2533_v6 = vld [vmem:[%s2780_s3 + $0xe8] sm:$0xff]   ;;  %v2524_v27 = vld [vmem:[%s2780_s3 + $0x10] sm:$0xff]  }
  0x9d   :  { %1452 = vmatprep.subr.bf16.mxu1 %v2446_v28  ;;  %v2534_v28 = vld [vmem:[%s2780_s3 + $0xa8] sm:$0xff]  }
  0x9f   :  { %1412 = vmatpush1.bf16.msra.mxu0 %v2441_v29  ;;  %v2525_v29 = vld [vmem:[%s2780_s3 + $0x48] sm:$0xff]  }
  0xa0   :  { %1453 = vmatpush1.bf16.msra.mxu1 %v2444_v30  ;;  %1413 = vmatprep.subr.bf16.mxu0 %v2449_v31  ;;  %v2535_v30 = vld [vmem:[%s2780_s3 + $0xe0] sm:$0xff]   ;;  %v2526_v31 = vld [vmem:[%s2780_s3 + $0x8] sm:$0xff]  }
  0xa1   :  { %1454 = vmatprep.subr.bf16.mxu1 %v2452_v51  ;;  %v2536_v51 = vld [vmem:[%s2780_s3 + $0xa0] sm:$0xff]  }
  0xa3   :  { %1414 = vmatpush1.bf16.msra.mxu0 %v2447_v32  ;;  %v2527_v32 = vld [vmem:[%s2780_s3 + $0x40] sm:$0xff]  }
  0xa4   :  { %1455 = vmatpush1.bf16.msra.mxu1 %v2450_v33  ;;  %1415 = vmatprep.subr.bf16.mxu0 %v2455_v34  ;;  %v2537_v33 = vld [vmem:[%s2780_s3 + $0xd8] sm:$0xff]   ;;  %v2528_v34 = vld [vmem:[%s2780_s3] sm:$0xff]  }
  0xa5   :  { %1456 = vmatprep.subr.bf16.mxu1 %v2458_v35  ;;  %v2538_v35 = vld [vmem:[%s2780_s3 + $0x98] sm:$0xff]  }
  0xa7   :  { %1416 = vmatpush1.bf16.msra.mxu0 %v2453_v36  ;;  %v2539_v36 = vld [vmem:[%s2780_s3 + $0xd0] sm:$0xff]  }
  0xa8   :  { %1457 = vmatpush1.bf16.msra.mxu1 %v2456_v37  ;;  %1417 = vmatprep.subr.bf16.mxu0 %v2461_v38  ;;  %v2540_v37 = vld [vmem:[%s2780_s3 + $0x90] sm:$0xff]  }
  0xa9   :  { %1458 = vmatprep.subr.bf16.mxu1 %v2464_v39 }
  0xab   :  { %1418 = vmatpush1.bf16.msra.mxu0 %v2459_v40 }
  0xac   :  { %1459 = vmatpush1.bf16.msra.mxu1 %v2462_v41  ;;  %1419 = vmatprep.subr.bf16.mxu0 %v2467_v42  ;;  %v2541_v42 = vld [vmem:[%s2780_s3 + $0xc8] sm:$0xff]  }
  0xad   :  { %1460 = vmatprep.subr.bf16.mxu1 %v2470_v43  ;;  %v2542_v43 = vld [vmem:[%s2780_s3 + $0x88] sm:$0xff]  }
  0xaf   :  { %1420 = vmatpush2.bf16.msra.mxu0 %v2465_v44 }
  0xb0   :  { %1461 = vmatpush2.bf16.msra.mxu1 %v2468_v45  ;;  %1421 = vmatprep.subr.bf16.mxu0 %v2473_v46 }
  0xb1   :  { %1462 = vmatprep.subr.bf16.mxu1 %v2476_v47 }
  0xb3   :  { %1422 = vmatpush2.bf16.msra.mxu0 %v2471_v48  ;;  %v2543_v48 = vld [vmem:[%s2780_s3 + $0xc0] sm:$0xff]  }
  0xb4   :  { %1463 = vmatpush2.bf16.msra.mxu1 %v2474_v49  ;;  %1423 = vmatprep.subr.bf16.mxu0 %v2479_v50  ;;  %v2544_v49 = vld [vmem:[%s2780_s3 + $0x80] sm:$0xff]   ;;  %v238_v50 = vlaneseq }
  0xb5   :  { %1464 = vmatprep.subr.bf16.mxu1 %v2482_v52 }
  0xb6   :  { %v239_v52 = vshrl.u32 %v238_v50, 7 }
  0xb7   :  { %1424 = vmatpush2.bf16.msra.mxu0 %v2477_v53 }
  0xb8   :  { %1465 = vmatpush2.bf16.msra.mxu1 %v2480_v54  ;;  %1425 = vmatprep.subr.bf16.mxu0 %v2485_v55  ;;  %v240_v53 = vsub.s32 0, %v239_v52  ;;  %v236_v54 = vld [vmem:[%s2779_s2] sm:$0xf]  ;;  %v244_v55 = vsub.s32 1, %v239_v52 }
  0xb9   :  { %1466 = vmatprep.subr.bf16.mxu1 %v2488_v56 }
  0xba   :  { %v241_v56 = vrot.slane %v236_v54, %v240_v53 }
  0xbb   :  { %1426 = vmatpush2.bf16.msra.mxu0 %v2483_v57  ;;  %v245_v57 = vrot.slane %v236_v54, %v244_v55 }
  0xbc   :  { %1467 = vmatpush2.bf16.msra.mxu1 %v2486_v58  ;;  %1427 = vmatprep.subr.bf16.mxu0 %v2491_v59 }
  0xbd   :  { %1468 = vmatprep.subr.bf16.mxu1 %v2494_v60 }
  0xbf   :  { %1428 = vmatpush2.bf16.msra.mxu0 %v2489_v61 }
  0xc0   :  { %1469 = vmatpush2.bf16.msra.mxu1 %v2492_v62  ;;  %1429 = vmatprep.subr.bf16.mxu0 %v2497_v63 }
  0xc1   :  { %1470 = vmatprep.subr.bf16.mxu1 %v2500_v0 }
  0xc3   :  { %1430 = vmatpush2.bf16.msra.mxu0 %v2495_v1 }
  0xc4   :  { %1471 = vmatpush2.bf16.msra.mxu1 %v2498_v2  ;;  %1431 = vmatprep.subr.bf16.mxu0 %v2503_v3 }
  0xc5   :  { %1472 = vmatprep.subr.bf16.mxu1 %v2506_v4 }
  0xc7   :  { %1432 = vmatpush2.bf16.msra.mxu0 %v2501_v5 }
  0xc8   :  { %1473 = vmatpush2.bf16.msra.mxu1 %v2504_v8  ;;  %1433 = vmatprep.subr.bf16.mxu0 %v2509_v9 }
  0xc9   :  { %1474 = vmatprep.subr.bf16.mxu1 %v2512_v10 }
  0xcb   :  { %1434 = vmatpush2.bf16.msra.mxu0 %v2507_v11 }
  0xcc   :  { %1475 = vmatpush2.bf16.msra.mxu1 %v2510_v12  ;;  %2159 = vmatprep.subr.bf16.mxu0 %v2513_v14 }
  0xcd   :  { %2181 = vmatprep.subr.bf16.mxu1 %v2529_v21 }
  0xce   :  { %1436 = vmatmul.mubr.bf16.vlgmr.msra.gmra.mxu0 %v2635_v7  ;;  %v2519_v7 = vld [vmem:[%s2780_s3 + $0x60] sm:$0xff]  }
  0xcf   :  { %1477 = vmatmul.mubr.bf16.vlgmr.msra.gmra.mxu1 %v2652_v13  ;;  %2160 = vmatpush3.bf16.msra.mxu0 %v2514_v15  ;;  %v2520_v13 = vld [vmem:[%s2780_s3 + $0x20] sm:$0xff]   ;;  %v248_v15 = vsub.s32 2, %v239_v52 }
  0xd0   :  { %2161 = vmatprep.subr.bf16.mxu0 %v2515_v16  ;;  %2182 = vmatpush3.bf16.msra.mxu1 %v2530_v22  ;;  %v252_v16 = vsub.s32 3, %v239_v52  ;;  %v2155_v52 = vld [vmem:[%s2783_s6] ss:$0 sm:$0xff] }
  0xd1   :  { %2183 = vmatprep.subr.bf16.mxu1 %v2531_v23 }
  0xd3   :  { %2162 = vmatpush3.bf16.msra.mxu0 %v2516_v17  ;;  %v249_v17 = vrot.slane %v236_v54, %v248_v15 }
  0xd4   :  { %2163 = vmatprep.subr.bf16.mxu0 %v2517_v18  ;;  %2184 = vmatpush3.bf16.msra.mxu1 %v2532_v25  ;;  %v253_v18 = vrot.slane %v236_v54, %v252_v16 }
  0xd5   :  { %2185 = vmatprep.subr.bf16.mxu1 %v2533_v6 }
  0xd7   :  { %2164 = vmatpush3.bf16.msra.mxu0 %v2518_v19 }
  0xd8   :  { %2165 = vmatprep.subr.bf16.mxu0 %v2519_v7  ;;  %2186 = vmatpush3.bf16.msra.mxu1 %v2534_v28 }
  0xd9   :  { %2187 = vmatprep.subr.bf16.mxu1 %v2535_v30 }
  0xdb   :  { %2166 = vmatpush3.bf16.msra.mxu0 %v2520_v13 }
  0xdc   :  { %2167 = vmatprep.subr.bf16.mxu0 %v2521_v20  ;;  %2188 = vmatpush3.bf16.msra.mxu1 %v2536_v51 }
  0xdd   :  { %2189 = vmatprep.subr.bf16.mxu1 %v2537_v33  ;;  %v2545_v33 = vld [vmem:[%s2782_s5 + $0x8] sm:$0xff]  }
  0xdf   :  { %2168 = vmatpush3.bf16.msra.mxu0 %v2522_v24 }
  0xe0   :  { %2169 = vmatprep.subr.bf16.mxu0 %v2523_v26  ;;  %2190 = vmatpush3.bf16.msra.mxu1 %v2538_v35  ;;  %v2546_v35 = vld [vmem:[%s2782_s5] sm:$0xff]  }
  0xe1   :  { %2191 = vmatprep.subr.bf16.mxu1 %v2539_v36 }
  0xe3   :  { %2170 = vmatpush3.bf16.msra.mxu0 %v2524_v27 }
  0xe4   :  { %2171 = vmatprep.subr.bf16.mxu0 %v2525_v29  ;;  %2192 = vmatpush3.bf16.msra.mxu1 %v2540_v37 }
  0xe5   :  { %2193 = vmatprep.subr.bf16.mxu1 %v2541_v42 }
  0xe7   :  { %2172 = vmatpush3.bf16.msra.mxu0 %v2526_v31 }
  0xe8   :  { %2173 = vmatprep.subr.bf16.mxu0 %v2527_v32  ;;  %2194 = vmatpush3.bf16.msra.mxu1 %v2542_v43 }
  0xe9   :  { %2195 = vmatprep.subr.bf16.mxu1 %v2543_v48 }
  0xeb   :  { %2174 = vmatpush3.bf16.msra.mxu0 %v2528_v34  ;;  %v2576_v34 = vmov 0.0  }
  0xec   :  { %2196 = vmatpush3.bf16.msra.mxu1 %v2544_v49  ;;  %2206 = vmatprep.subr.bf16.mxu0 %v2576_v34 }
 0x10e   :  { %v1273_v38 = vpop.f32.mrf.mxu0 }
 0x10f   :  { %v1314_v39 = vpop.f32.mrf.mxu1  ;;  %v1274_v58 = vadd.f32 %v1273_v38, %v241_v56 }
 0x110   :  { %v1275_v40 = vpop.f32.mrf.mxu0 }
 0x111   :  { %v1316_v41 = vpop.f32.mrf.mxu1  ;;  %v1276_v59 = vadd.f32 %v1275_v40, %v245_v57  ;;  %v1315_v60 = vadd.f32 %v1314_v39, %v1274_v58 }
 0x112   :  { %v1277_v44 = vpop.f32.mrf.mxu0 }
 0x113   :  { %v1318_v45 = vpop.f32.mrf.mxu1  ;;  %v1317_v63 = vadd.f32 %v1316_v41, %v1276_v59  ;;  %v2122_v41 = vld [vmem:[%s2781_s4] ss:$0 sm:$0xff] }
 0x114   :  { %v1278_v46 = vpop.f32.mrf.mxu0 }
 0x115   :  { %v1319_v47 = vpop.f32.mrf.mxu1 }
 0x14e   :  { %v1355_v61 = vpop.f32.mrf.mxu0 }
 0x14f   :  { %v1396_v62 = vpop.f32.mrf.mxu1  ;;  %v1356_v0 = vadd.f32 %v1355_v61, %v1315_v60 }
 0x150   :  { %v1357_v1 = vpop.f32.mrf.mxu0  ;;  %v1397_v19 = vadd.f32 %v1396_v62, %v249_v17 }
 0x151   :  { %v1398_v2 = vpop.f32.mrf.mxu1  ;;  %v1358_v3 = vadd.f32 %v1357_v1, %v1317_v63  ;;  %v1485_v4 = vmax.f32 %v1356_v0, 0.0 }
 0x152   :  { %v1359_v5 = vpop.f32.mrf.mxu0  ;;  %v1399_v20 = vadd.f32 %v1398_v2, %v253_v18 }
 0x153   :  { %v1400_v8 = vpop.f32.mrf.mxu1  ;;  %v1486_v9 = vmax.f32 %v1358_v3, 0.0  ;;  %v1489_v14 = vpack.c.bf16 %v1485_v4, %v1485_v4 }
 0x154   :  { %v1360_v10 = vpop.f32.mrf.mxu0 }
 0x155   :  { %v1401_v11 = vpop.f32.mrf.mxu1  ;;  %v1490_v12 = vpack.c.bf16 %v1486_v9, %v1486_v9 }
 0x157   :  { %1788 = vmatprep.mubr.bf16.mxu0 %v1490_v12 }
 0x158   :  { %1789 = vmatmul.mubr.bf16.vlgmr.msra.gmra.mxu0 %v1489_v14 }
 0x159   :  { %2207 = vmatpush3.bf16.msra.mxu0 %v2545_v33  ;;  %2210 = vmatprep.mubr.msk.bf16.mxu0 %vm2577_vm0, %v2576_v34 }
 0x15a   :  { %2208 = vmatprep.subr.bf16.mxu0 %v2576_v34 }
 0x15d   :  { %2209 = vmatpush3.bf16.msra.mxu0 %v2546_v35 }
 0x18e   :  { %v1437_v7 = vpop.f32.mrf.mxu0 }
 0x18f   :  { %v1478_v13 = vpop.f32.mrf.mxu1  ;;  %v1438_v21 = vadd.f32 %v1437_v7, %v1397_v19 }
 0x190   :  { %v1439_v22 = vpop.f32.mrf.mxu0 }
 0x191   :  { %v1480_v23 = vpop.f32.mrf.mxu1  ;;  %v1479_v24 = vadd.f32 %v1478_v13, %v1438_v21  ;;  %v1440_v25 = vadd.f32 %v1439_v22, %v1399_v20 }
 0x192   :  { %v1441_v26 = vpop.f32.mrf.mxu0 }
 0x193   :  { %v1482_v6 = vpop.f32.mrf.mxu1  ;;  %v1481_v27 = vadd.f32 %v1480_v23, %v1440_v25  ;;  %v1487_v28 = vmax.f32 %v1479_v24, 0.0 }
 0x194   :  { %v1442_v29 = vpop.f32.mrf.mxu0 }
 0x195   :  { %v1483_v30 = vpop.f32.mrf.mxu1  ;;  %v1488_v31 = vmax.f32 %v1481_v27, 0.0  ;;  %v1491_v32 = vpack.c.bf16 %v1487_v28, %v1487_v28 }
 0x197   :  { %v1492_v51 = vpack.c.bf16 %v1488_v31, %v1488_v31 }
 0x199   :  { %1828 = vmatprep.mubr.bf16.mxu1 %v1492_v51 }
 0x19a   :  { %1829 = vmatmul.mubr.bf16.vlgmr.msra.gmra.mxu1 %v1491_v32 }
 0x218   :  { %v2175_v36 = vpop.f32.mrf.mxu0 }
 0x21a   :  { %v2176_v37 = vpop.f32.mrf.mxu0 }
 0x21b   :  { %v2177_v38 = vadd.f32 %v2176_v37, %v2175_v36 }
 0x21c   :  { %v2178_v39 = vpop.f32.mrf.mxu0 }
 0x21d   :  { %v1791_v44 = vadd.f32 %v2177_v38, %v2122_v41 }
 0x21e   :  { %v2179_v40 = vpop.f32.mrf.mxu0 }
 0x25a   :  { %v2197_v42 = vpop.f32.mrf.mxu1 }
 0x25c   :  { %v2198_v43 = vpop.f32.mrf.mxu1 }
 0x25d   :  { %v2199_v45 = vadd.f32 %v2198_v43, %v2197_v42 }
 0x25e   :  { %v2200_v46 = vpop.f32.mrf.mxu1 }
 0x25f   :  { %v1831_v47 = vadd.f32 %v2199_v45, %v1791_v44 }
 0x260   :  { %v2201_v48 = vpop.f32.mrf.mxu1 }
 0x261   :  { %v1836_v49 = vmax.f32 %v1831_v47, 0.0 }
 0x263   :  { %v1837_v50 = vpack.c.bf16 %v1836_v49, %v1836_v49 }
 0x265   :  { %2211 = vmatmul.mubr.msk.bf16.vlgmr.msra.gmra.mxu0 %vm1861_vm1, %v1837_v50 }
 0x325   :  { %v1899_v53 = vpop.f32.mrf.mxu0 }
 0x326   :  { %v1900_v54 = vadd.f32 %v2155_v52, %v1899_v53 }
 0x327   :  { %v2212_v55 = vpop.f32.mrf.mxu0 }
 0x328   :  { %v1906_v56 = vsel %vm1905_vm2, %v1900_v54, -inf }
 0x329   :  { %1907 = vmax.xlane.f32.xlu0 %v1906_v56  ;;  %v1902_v57 = vpop.f32.mrf.mxu0 }
 0x32b   :  { %v2213_v58 = vpop.f32.mrf.mxu0 }
 0x3b2   :  { %v1908_v59 = vpop.xlane.xlu0 %1907 }
 0x3b3   :  { %v1909_v60 = vsub.f32 %v1900_v54, %v1908_v59 }
 0x3b5   :  { %v1910_v61 = vmul.f32 1.442695, %v1909_v60 }
 0x3b7   :  { %2547 = vpow2.f32 %v1910_v61 }
 0x3c4   :  { %v2548_v62 = vpop.eup %2547 }
 0x3c5   :  { %v1912_v63 = vsel %vm1905_vm2, %v2548_v62, 0.0 }
 0x3c6   :  { %1913 = vadd.xlane.f32.xlu0 %v1912_v63 }
 0x44f   :  { %v1914_v0 = vpop.xlane.xlu0 %1913 }
 0x450   :  { %2549 = vlog2.f32 %v1914_v0 }
 0x45d   :  { %v2550_v1 = vpop.eup %2549 }
 0x45e   :  { %v1916_v2 = vmul.f32 0.6931472, %v2550_v1 }
 0x460   :  { %v1917_v3 = vsub.f32 %v1909_v60, %v1916_v2 }
 0x462   :  { %1918 = vst.msk [vmem:[%s2784_s7] sm:$0xff] %vm1905_vm2, %v1917_v3 }
 0x463   :  { %1923 = vsyncpa [#allocation3], 1 }

</bundles_post_ra>
